<compile_context>
chip_gen: v6e
topology: v6e:2x2x1
jax: 0.10.0
libtpu: 0.0.40
codegen_flags: <defaults>
</compile_context>

<pallas_src>
import functools

import jax
import jax.numpy as jnp
from jax import lax
from jax.experimental import pallas as pl
from jax.experimental.pallas import tpu as pltpu


def unet_down_kernel(x_ref, w_ref, o_ref, *, ho, wo):
    # x_ref: (1, Q, K)  bf16 phase-packed padded input, Q=(ho+1)*(wo+1), K=4*Cin
    # w_ref: (4, K, Ct) bf16 per-shift weight matrices, shift s = 2*a + b
    # o_ref: (1, Ct, P) output in [channel, spatial] order, P = ho*wo
    ct = o_ref.shape[1]
    wq = wo + 1                      # row pitch of the padded output grid
    qv = ho * wo + ho - 1            # padded-grid rows we actually compute

    # ---- Conv2d(4, stride=2, pad=1, bias=False): 4 shifted MXU matmuls ------
    acc = jnp.zeros((qv, ct), jnp.float32)
    for a in range(2):
        for b in range(2):
            s = a * wq + b                                   # static offsets
            xs = x_ref[0, s:s + qv, :]                       # [qv, K] bf16
            acc = acc + jnp.dot(xs, w_ref[2 * a + b],
                                preferred_element_type=jnp.float32)

    # Positions with col == wo on the padded (ho, wo+1) grid are not real
    # outputs -> mask them out of the instance-norm statistics (one select).
    q_idx = lax.broadcasted_iota(jnp.int32, (qv, 1), 0)
    valid = (q_idx % wq) < wo                                # [qv, 1]
    accm = jnp.where(valid, acc, 0.0)

    # ---- InstanceNorm2d(affine=False, eps=1e-5), biased var, f32, one pass --
    inv_p = 1.0 / (ho * wo)
    mean = jnp.sum(accm, axis=0, keepdims=True) * inv_p
    msq = jnp.sum(accm * accm, axis=0, keepdims=True) * inv_p
    var = msq - mean * mean
    y = (acc - mean) * lax.rsqrt(var + 1e-5)

    # ---- LeakyReLU(0.2) ------------------------------------------------------
    y = jnp.where(y >= 0, y, 0.2 * y)

    # ---- lane-dense [Ct, P] store: drop the padded column, row by row --------
    # (static slice offsets; when wo is a multiple of 128 these are aligned,
    #  unmasked full-lane stores)
    yt = y.astype(o_ref.dtype).T                             # [Ct, qv]
    for oh in range(ho):
        o_ref[0, :, oh * wo:(oh + 1) * wo] = yt[:, oh * wq:oh * wq + wo]


def unet_down(x_nchw, weight):
    """x_nchw: [N, Cin, H, W]; weight: PyTorch layout [Cout, Cin, 4, 4].
    Returns NCHW output [N, Cout, H//2, W//2]."""
    N, Cin, H, W = x_nchw.shape
    Cout = weight.shape[0]
    assert H % 2 == 0 and W % 2 == 0
    Ho, Wo = H // 2, W // 2
    P, K, Q = Ho * Wo, 4 * Cin, (Ho + 1) * (Wo + 1)

    # NCHW -> NHWC, 1-px zero pad, 2x2 space-to-depth, cast to bf16.
    # Single cheap pad/reshape/transpose pass; no im2col duplication in HBM.
    x = jnp.transpose(x_nchw, (0, 2, 3, 1))
    x = jnp.pad(x, ((0, 0), (1, 1), (1, 1), (0, 0)))
    x = x.reshape(N, Ho + 1, 2, Wo + 1, 2, Cin)
    x = jnp.transpose(x, (0, 1, 3, 2, 4, 5)).reshape(N, Q, K)
    x = x.astype(jnp.bfloat16)

    # weight [Cout, Cin, 4, 4] -> per-shift (a, b) matrices [4, K, Cout];
    # tap (di, dj) = (2a+i, 2b+j), K ordered as (i, j, cin) to match phase pack.
    w = jnp.transpose(weight, (2, 3, 1, 0))                  # [di, dj, Cin, Cout]
    w = w.reshape(2, 2, 2, 2, Cin, Cout)                     # [a, i, b, j, Cin, Cout]
    w = jnp.transpose(w, (0, 2, 1, 3, 4, 5)).reshape(4, K, Cout)
    w = w.astype(jnp.bfloat16)

    # Tile Cout: bounds the f32 acc / output / weight blocks and gives a second
    # parallel grid axis (keeps both v7x TensorCores busy at small N).
    ct = Cout if Cout <= 256 else 256
    if Cout % ct:
        ct = Cout
    num_ct = Cout // ct

    kernel = functools.partial(unet_down_kernel, ho=Ho, wo=Wo)
    out = pl.pallas_call(
        kernel,
        out_shape=jax.ShapeDtypeStruct((N, Cout, P), x_nchw.dtype),
        grid_spec=pltpu.PrefetchScalarGridSpec(
            num_scalar_prefetch=0,
            # Cout tiles outermost so the weight block index is constant across
            # the inner N loop -> each (possibly multi-MiB) weight tile is
            # DMA'd once per Cout tile instead of once per (n, c) step.
            grid=(num_ct, N),
            in_specs=[
                pl.BlockSpec((1, Q, K), lambda c, n: (n, 0, 0)),
                pl.BlockSpec((4, K, ct), lambda c, n: (0, 0, c)),
            ],
            out_specs=pl.BlockSpec((1, ct, P), lambda c, n: (n, c, 0)),
        ),
        compiler_params=pltpu.CompilerParams(
            dimension_semantics=("parallel", "parallel"),
            vmem_limit_bytes=48 * 1024 * 1024),
    )(x, w)

    # [N, Cout, P] is already NCHW-major: the final reshape is free.
    return out.reshape(N, Cout, Ho, Wo)


def _reference(x_nchw, weight):
    y = lax.conv_general_dilated(
        x_nchw, weight, window_strides=(2, 2), padding=((1, 1), (1, 1)),
        dimension_numbers=("NCHW", "OIHW", "NCHW"))
    mean = jnp.mean(y, axis=(2, 3), keepdims=True)
    var = jnp.mean((y - mean) ** 2, axis=(2, 3), keepdims=True)
    yn = (y - mean) * lax.rsqrt(var + 1e-5)
    return jnp.where(yn >= 0, yn, 0.2 * yn)


if __name__ == "__main__":
    key = jax.random.PRNGKey(0)
    kx, kw = jax.random.split(key)

    N, Cin, Cout, H, W = 2, 4, 8, 16, 16
    x = jax.random.normal(kx, (N, Cin, H, W), dtype=jnp.float32)
    # Deterministic synthetic conv weight, PyTorch layout [Cout, Cin, kh, kw]
    w = jax.random.normal(kw, (Cout, Cin, 4, 4), dtype=jnp.float32) * 0.1

    out = jax.block_until_ready(unet_down(x, w))
    ref = _reference(x, w)

    assert out.shape == (N, Cout, H // 2, W // 2)
    # bf16 MXU operands vs f32 reference -> modest tolerance (expected).
    assert jnp.allclose(out, ref, rtol=2e-2, atol=2e-2), float(
        jnp.max(jnp.abs(out - ref)))

    print("KERNEL_OK")
</pallas_src>

<mosaic_0001>
module attributes {stable_mosaic.version = 11 : i64} {
  func.func @unet_down_kernel(%arg0: i32, %arg1: i32, %arg2: memref<1x81x16xbf16, #tpu.memory_space<vmem>>, %arg3: memref<4x16x8xbf16, #tpu.memory_space<vmem>>, %arg4: memref<1x8x64xf32, #tpu.memory_space<vmem>>) attributes {dimension_semantics = [#tpu.dimension_semantics<parallel>, #tpu.dimension_semantics<parallel>], iteration_bounds = array<i64: 1, 2>, scalar_prefetch = 0 : i64, scratch_operands = 0 : i64, tpu.core_type = #tpu.core_type<tc>, window_params = [{transform_indices = @transform_0, window_bounds = array<i64: 1, 81, 16>}, {transform_indices = @transform_1, window_bounds = array<i64: 4, 16, 8>}, {transform_indices = @transform_2, window_bounds = array<i64: 1, 8, 64>}]} {
    %cst = arith.constant 0.000000e+00 : f32
    %0 = vector.broadcast %cst : f32 to vector<71x8xf32>
    %c0 = arith.constant 0 : index
    %c0_0 = arith.constant 0 : index
    %c0_1 = arith.constant 0 : index
    %1 = vector.load %arg2[%c0, %c0_0, %c0_1] : memref<1x81x16xbf16, #tpu.memory_space<vmem>>, vector<1x71x16xbf16>
    %2 = vector.shape_cast %1 : vector<1x71x16xbf16> to vector<71x16xbf16>
    %c0_2 = arith.constant 0 : index
    %c0_3 = arith.constant 0 : index
    %c0_4 = arith.constant 0 : index
    %3 = vector.load %arg3[%c0_2, %c0_3, %c0_4] : memref<4x16x8xbf16, #tpu.memory_space<vmem>>, vector<1x16x8xbf16>
    %4 = vector.shape_cast %3 : vector<1x16x8xbf16> to vector<16x8xbf16>
    %cst_5 = arith.constant dense<0.000000e+00> : vector<71x8xf32>
    %5 = tpu.matmul %2, %4, %cst_5 {dimension_numbers = #tpu.dot_dimension_numbers<[1], [0], [0], [1], [0, 0, 1, 1], [], []>} : vector<71x16xbf16>, vector<16x8xbf16>, vector<71x8xf32> -> vector<71x8xf32>
    %6 = arith.addf %0, %5 : vector<71x8xf32>
    %c0_6 = arith.constant 0 : index
    %c1 = arith.constant 1 : index
    %c0_7 = arith.constant 0 : index
    %7 = vector.load %arg2[%c0_6, %c1, %c0_7] : memref<1x81x16xbf16, #tpu.memory_space<vmem>>, vector<1x71x16xbf16>
    %8 = vector.shape_cast %7 : vector<1x71x16xbf16> to vector<71x16xbf16>
    %c1_8 = arith.constant 1 : index
    %c0_9 = arith.constant 0 : index
    %c0_10 = arith.constant 0 : index
    %9 = vector.load %arg3[%c1_8, %c0_9, %c0_10] : memref<4x16x8xbf16, #tpu.memory_space<vmem>>, vector<1x16x8xbf16>
    %10 = vector.shape_cast %9 : vector<1x16x8xbf16> to vector<16x8xbf16>
    %cst_11 = arith.constant dense<0.000000e+00> : vector<71x8xf32>
    %11 = tpu.matmul %8, %10, %cst_11 {dimension_numbers = #tpu.dot_dimension_numbers<[1], [0], [0], [1], [0, 0, 1, 1], [], []>} : vector<71x16xbf16>, vector<16x8xbf16>, vector<71x8xf32> -> vector<71x8xf32>
    %12 = arith.addf %6, %11 : vector<71x8xf32>
    %c0_12 = arith.constant 0 : index
    %c9 = arith.constant 9 : index
    %c0_13 = arith.constant 0 : index
    %13 = vector.load %arg2[%c0_12, %c9, %c0_13] : memref<1x81x16xbf16, #tpu.memory_space<vmem>>, vector<1x71x16xbf16>
    %14 = vector.shape_cast %13 : vector<1x71x16xbf16> to vector<71x16xbf16>
    %c2 = arith.constant 2 : index
    %c0_14 = arith.constant 0 : index
    %c0_15 = arith.constant 0 : index
    %15 = vector.load %arg3[%c2, %c0_14, %c0_15] : memref<4x16x8xbf16, #tpu.memory_space<vmem>>, vector<1x16x8xbf16>
    %16 = vector.shape_cast %15 : vector<1x16x8xbf16> to vector<16x8xbf16>
    %cst_16 = arith.constant dense<0.000000e+00> : vector<71x8xf32>
    %17 = tpu.matmul %14, %16, %cst_16 {dimension_numbers = #tpu.dot_dimension_numbers<[1], [0], [0], [1], [0, 0, 1, 1], [], []>} : vector<71x16xbf16>, vector<16x8xbf16>, vector<71x8xf32> -> vector<71x8xf32>
    %18 = arith.addf %12, %17 : vector<71x8xf32>
    %c0_17 = arith.constant 0 : index
    %c10 = arith.constant 10 : index
    %c0_18 = arith.constant 0 : index
    %19 = vector.load %arg2[%c0_17, %c10, %c0_18] : memref<1x81x16xbf16, #tpu.memory_space<vmem>>, vector<1x71x16xbf16>
    %20 = vector.shape_cast %19 : vector<1x71x16xbf16> to vector<71x16xbf16>
    %c3 = arith.constant 3 : index
    %c0_19 = arith.constant 0 : index
    %c0_20 = arith.constant 0 : index
    %21 = vector.load %arg3[%c3, %c0_19, %c0_20] : memref<4x16x8xbf16, #tpu.memory_space<vmem>>, vector<1x16x8xbf16>
    %22 = vector.shape_cast %21 : vector<1x16x8xbf16> to vector<16x8xbf16>
    %cst_21 = arith.constant dense<0.000000e+00> : vector<71x8xf32>
    %23 = tpu.matmul %20, %22, %cst_21 {dimension_numbers = #tpu.dot_dimension_numbers<[1], [0], [0], [1], [0, 0, 1, 1], [], []>} : vector<71x16xbf16>, vector<16x8xbf16>, vector<71x8xf32> -> vector<71x8xf32>
    %24 = arith.addf %18, %23 : vector<71x8xf32>
    %25 = tpu.iota {dimensions = array<i32: 0>} : vector<71x1xi32>
    %c9_i32 = arith.constant 9 : i32
    %c0_i32 = arith.constant 0 : i32
    %26 = arith.cmpi eq, %c9_i32, %c0_i32 : i32
    %c1_i32 = arith.constant 1 : i32
    %27 = arith.select %26, %c1_i32, %c9_i32 : i32
    %28 = vector.broadcast %27 : i32 to vector<71x1xi32>
    %29 = arith.remsi %25, %28 : vector<71x1xi32>
    %c0_i32_22 = arith.constant 0 : i32
    %30 = vector.broadcast %c0_i32_22 : i32 to vector<71x1xi32>
    %31 = arith.cmpi ne, %29, %30 : vector<71x1xi32>
    %c0_i32_23 = arith.constant 0 : i32
    %32 = vector.broadcast %c0_i32_23 : i32 to vector<71x1xi32>
    %33 = arith.cmpi slt, %29, %32 : vector<71x1xi32>
    %c0_i32_24 = arith.constant 0 : i32
    %34 = arith.cmpi slt, %27, %c0_i32_24 : i32
    %35 = vector.broadcast %34 : i1 to vector<71x1xi1>
    %36 = vector.broadcast %35 : vector<71x1xi1> to vector<71x1xi1>
    %37 = arith.xori %33, %36 : vector<71x1xi1>
    %38 = arith.andi %37, %31 : vector<71x1xi1>
    %39 = vector.broadcast %27 : i32 to vector<71x1xi32>
    %40 = arith.addi %29, %39 : vector<71x1xi32>
    %41 = arith.select %38, %40, %29 : vector<71x1xi1>, vector<71x1xi32>
    %c8_i32 = arith.constant 8 : i32
    %42 = vector.broadcast %c8_i32 : i32 to vector<71x1xi32>
    %43 = arith.cmpi slt, %41, %42 : vector<71x1xi32>
    %cst_25 = arith.constant 0.000000e+00 : f32
    %44 = vector.shape_cast %43 : vector<71x1xi1> to vector<71x1xi1>
    %45 = vector.broadcast %44 : vector<71x1xi1> to vector<71x8xi1>
    %46 = vector.broadcast %cst_25 : f32 to vector<71x8xf32>
    %47 = arith.select %45, %24, %46 : vector<71x8xi1>, vector<71x8xf32>
    %cst_26 = arith.constant dense<0.000000e+00> : vector<8xf32>
    %48 = vector.multi_reduction <add>, %47, %cst_26 [0] : vector<71x8xf32> to vector<8xf32>
    %49 = vector.shape_cast %48 : vector<8xf32> to vector<1x8xf32>
    %cst_27 = arith.constant 1.562500e-02 : f32
    %50 = vector.broadcast %cst_27 : f32 to vector<1x8xf32>
    %51 = arith.mulf %49, %50 : vector<1x8xf32>
    %52 = arith.mulf %47, %47 : vector<71x8xf32>
    %cst_28 = arith.constant dense<0.000000e+00> : vector<8xf32>
    %53 = vector.multi_reduction <add>, %52, %cst_28 [0] : vector<71x8xf32> to vector<8xf32>
    %54 = vector.shape_cast %53 : vector<8xf32> to vector<1x8xf32>
    %cst_29 = arith.constant 1.562500e-02 : f32
    %55 = vector.broadcast %cst_29 : f32 to vector<1x8xf32>
    %56 = arith.mulf %54, %55 : vector<1x8xf32>
    %57 = arith.mulf %51, %51 : vector<1x8xf32>
    %58 = arith.subf %56, %57 : vector<1x8xf32>
    %59 = vector.broadcast %51 : vector<1x8xf32> to vector<71x8xf32>
    %60 = arith.subf %24, %59 : vector<71x8xf32>
    %cst_30 = arith.constant 9.99999974E-6 : f32
    %61 = vector.broadcast %cst_30 : f32 to vector<1x8xf32>
    %62 = arith.addf %58, %61 : vector<1x8xf32>
    %63 = math.rsqrt %62 : vector<1x8xf32>
    %64 = vector.broadcast %63 : vector<1x8xf32> to vector<71x8xf32>
    %65 = arith.mulf %60, %64 : vector<71x8xf32>
    %cst_31 = arith.constant 0.000000e+00 : f32
    %66 = vector.broadcast %cst_31 : f32 to vector<71x8xf32>
    %67 = arith.cmpf oge, %65, %66 : vector<71x8xf32>
    %cst_32 = arith.constant 2.000000e-01 : f32
    %68 = vector.broadcast %cst_32 : f32 to vector<71x8xf32>
    %69 = arith.mulf %68, %65 : vector<71x8xf32>
    %70 = arith.select %67, %65, %69 : vector<71x8xi1>, vector<71x8xf32>
    %71 = tpu.transpose %70, [1, 0] : vector<71x8xf32> -> vector<8x71xf32>
    %72 = vector.extract_strided_slice %71 {offsets = [0, 0], sizes = [8, 8], strides = [1, 1]} : vector<8x71xf32> to vector<8x8xf32>
    %c0_33 = arith.constant 0 : index
    %c0_34 = arith.constant 0 : index
    %c0_35 = arith.constant 0 : index
    %73 = vector.load %arg4[%c0_33, %c0_34, %c0_35] : memref<1x8x64xf32, #tpu.memory_space<vmem>>, vector<1x8x8xf32>
    %74 = vector.shape_cast %73 : vector<1x8x8xf32> to vector<8x8xf32>
    %75 = vector.shape_cast %72 : vector<8x8xf32> to vector<1x8x8xf32>
    tpu.vector_store %arg4[%c0_33, %c0_34, %c0_35], %75 {strides = array<i32>} : memref<1x8x64xf32, #tpu.memory_space<vmem>>, vector<1x8x8xf32>,
    %76 = vector.extract_strided_slice %71 {offsets = [0, 9], sizes = [8, 8], strides = [1, 1]} : vector<8x71xf32> to vector<8x8xf32>
    %c0_36 = arith.constant 0 : index
    %c0_37 = arith.constant 0 : index
    %c8 = arith.constant 8 : index
    %77 = vector.load %arg4[%c0_36, %c0_37, %c8] : memref<1x8x64xf32, #tpu.memory_space<vmem>>, vector<1x8x8xf32>
    %78 = vector.shape_cast %77 : vector<1x8x8xf32> to vector<8x8xf32>
    %79 = vector.shape_cast %76 : vector<8x8xf32> to vector<1x8x8xf32>
    tpu.vector_store %arg4[%c0_36, %c0_37, %c8], %79 {strides = array<i32>} : memref<1x8x64xf32, #tpu.memory_space<vmem>>, vector<1x8x8xf32>,
    %80 = vector.extract_strided_slice %71 {offsets = [0, 18], sizes = [8, 8], strides = [1, 1]} : vector<8x71xf32> to vector<8x8xf32>
    %c0_38 = arith.constant 0 : index
    %c0_39 = arith.constant 0 : index
    %c16 = arith.constant 16 : index
    %81 = vector.load %arg4[%c0_38, %c0_39, %c16] : memref<1x8x64xf32, #tpu.memory_space<vmem>>, vector<1x8x8xf32>
    %82 = vector.shape_cast %81 : vector<1x8x8xf32> to vector<8x8xf32>
    %83 = vector.shape_cast %80 : vector<8x8xf32> to vector<1x8x8xf32>
    tpu.vector_store %arg4[%c0_38, %c0_39, %c16], %83 {strides = array<i32>} : memref<1x8x64xf32, #tpu.memory_space<vmem>>, vector<1x8x8xf32>,
    %84 = vector.extract_strided_slice %71 {offsets = [0, 27], sizes = [8, 8], strides = [1, 1]} : vector<8x71xf32> to vector<8x8xf32>
    %c0_40 = arith.constant 0 : index
    %c0_41 = arith.constant 0 : index
    %c24 = arith.constant 24 : index
    %85 = vector.load %arg4[%c0_40, %c0_41, %c24] : memref<1x8x64xf32, #tpu.memory_space<vmem>>, vector<1x8x8xf32>
    %86 = vector.shape_cast %85 : vector<1x8x8xf32> to vector<8x8xf32>
    %87 = vector.shape_cast %84 : vector<8x8xf32> to vector<1x8x8xf32>
    tpu.vector_store %arg4[%c0_40, %c0_41, %c24], %87 {strides = array<i32>} : memref<1x8x64xf32, #tpu.memory_space<vmem>>, vector<1x8x8xf32>,
    %88 = vector.extract_strided_slice %71 {offsets = [0, 36], sizes = [8, 8], strides = [1, 1]} : vector<8x71xf32> to vector<8x8xf32>
    %c0_42 = arith.constant 0 : index
    %c0_43 = arith.constant 0 : index
    %c32 = arith.constant 32 : index
    %89 = vector.load %arg4[%c0_42, %c0_43, %c32] : memref<1x8x64xf32, #tpu.memory_space<vmem>>, vector<1x8x8xf32>
    %90 = vector.shape_cast %89 : vector<1x8x8xf32> to vector<8x8xf32>
    %91 = vector.shape_cast %88 : vector<8x8xf32> to vector<1x8x8xf32>
    tpu.vector_store %arg4[%c0_42, %c0_43, %c32], %91 {strides = array<i32>} : memref<1x8x64xf32, #tpu.memory_space<vmem>>, vector<1x8x8xf32>,
    %92 = vector.extract_strided_slice %71 {offsets = [0, 45], sizes = [8, 8], strides = [1, 1]} : vector<8x71xf32> to vector<8x8xf32>
    %c0_44 = arith.constant 0 : index
    %c0_45 = arith.constant 0 : index
    %c40 = arith.constant 40 : index
    %93 = vector.load %arg4[%c0_44, %c0_45, %c40] : memref<1x8x64xf32, #tpu.memory_space<vmem>>, vector<1x8x8xf32>
    %94 = vector.shape_cast %93 : vector<1x8x8xf32> to vector<8x8xf32>
    %95 = vector.shape_cast %92 : vector<8x8xf32> to vector<1x8x8xf32>
    tpu.vector_store %arg4[%c0_44, %c0_45, %c40], %95 {strides = array<i32>} : memref<1x8x64xf32, #tpu.memory_space<vmem>>, vector<1x8x8xf32>,
    %96 = vector.extract_strided_slice %71 {offsets = [0, 54], sizes = [8, 8], strides = [1, 1]} : vector<8x71xf32> to vector<8x8xf32>
    %c0_46 = arith.constant 0 : index
    %c0_47 = arith.constant 0 : index
    %c48 = arith.constant 48 : index
    %97 = vector.load %arg4[%c0_46, %c0_47, %c48] : memref<1x8x64xf32, #tpu.memory_space<vmem>>, vector<1x8x8xf32>
    %98 = vector.shape_cast %97 : vector<1x8x8xf32> to vector<8x8xf32>
    %99 = vector.shape_cast %96 : vector<8x8xf32> to vector<1x8x8xf32>
    tpu.vector_store %arg4[%c0_46, %c0_47, %c48], %99 {strides = array<i32>} : memref<1x8x64xf32, #tpu.memory_space<vmem>>, vector<1x8x8xf32>,
    %100 = vector.extract_strided_slice %71 {offsets = [0, 63], sizes = [8, 8], strides = [1, 1]} : vector<8x71xf32> to vector<8x8xf32>
    %c0_48 = arith.constant 0 : index
    %c0_49 = arith.constant 0 : index
    %c56 = arith.constant 56 : index
    %101 = vector.load %arg4[%c0_48, %c0_49, %c56] : memref<1x8x64xf32, #tpu.memory_space<vmem>>, vector<1x8x8xf32>
    %102 = vector.shape_cast %101 : vector<1x8x8xf32> to vector<8x8xf32>
    %103 = vector.shape_cast %100 : vector<8x8xf32> to vector<1x8x8xf32>
    tpu.vector_store %arg4[%c0_48, %c0_49, %c56], %103 {strides = array<i32>} : memref<1x8x64xf32, #tpu.memory_space<vmem>>, vector<1x8x8xf32>,
    return
  }
  func.func @transform_0(%arg0: i32, %arg1: i32) -> (i32, i32, i32) {
    %c0_i32 = arith.constant 0 : i32
    %c0_i32_0 = arith.constant 0 : i32
    %c0_i32_1 = arith.constant 0 : i32
    return %arg1, %c0_i32, %c0_i32_0 : i32, i32, i32
  }
  func.func @transform_1(%arg0: i32, %arg1: i32) -> (i32, i32, i32) {
    %c0_i32 = arith.constant 0 : i32
    %c0_i32_0 = arith.constant 0 : i32
    %c0_i32_1 = arith.constant 0 : i32
    return %c0_i32, %c0_i32_0, %arg0 : i32, i32, i32
  }
  func.func @transform_2(%arg0: i32, %arg1: i32) -> (i32, i32, i32) {
    %c0_i32 = arith.constant 0 : i32
    %c0_i32_0 = arith.constant 0 : i32
    return %arg1, %arg0, %c0_i32 : i32, i32, i32
  }
}

</mosaic_0001>

<bundles_post_ra>
// kernel: tpu_custom_call.1
= control target key start
LH: loop header
LB: loop body
LE: loop exit
PB: predicated region body
PF: predicated region fallthrough
CT: control target
= control target key end

     0   :  { %7 = vsyncpa [#allocation3], 0  ;;  %s2197_s0 = inlined_call_operand.vmem [shape: bf16[2,81,16], index: 0, kind: input, shape index: {}]   ;;  %s2198_s1 = inlined_call_operand.vmem [shape: bf16[4,16,8], index: 1, kind: input, shape index: {}]   ;;  %s2199_s2 = inlined_call_operand.hbm [shape: f32[2,8,64], index: 2, kind: output, shape index: {}]  }
   0x1   :  { %9 = vsyncpa [#allocation3 + $0x1], 0  ;;  %s1600_s9 = smov 0   ;;  %s1602_s10 = smov 0  }
   0x2   :  { %s1604_s11 = smov 0   ;;  %s1606_s12 = smov 0  }
   0x3   :  { %s1608_s13 = smov 0   ;;  %s1610_s14 = smov 0  }
   0x4 LB: > { %s1224_s15 = sadd.s32 4294967295, %s1573_s14   ;;  %s1225_s16 = sadd.s32 4294967294, %s1573_s14   ;;  %s1573_s14 = sphi %s1610_s14, %s15_s14   ;;  %s1569_s13 = sphi %s1608_s13, %s2236_s13   ;;  %s1565_s12 = sphi %s1606_s12, %s2235_s12   ;;  %s1561_s11 = sphi %s1604_s11, %s2234_s11   ;;  %s1557_s10 = sphi %s1602_s10, %s2233_s10   ;;  %s1553_s9 = sphi %s1600_s9, %s2232_s9  }
   0x5   : > { %s24_s17 = sadd.s32 1, %s1569_s13  ;;  %s88_s18 = sadd.s32 1, %s1561_s11 }
   0x6   : > { %p25_p0 = scmp.ge.s32.totalorder %s24_s17, 2  ;;  %p98_p1 = scmp.ne.s32.totalorder %s1561_s11, %s1557_s10 }
   0x7   : > { %p99_p2 = scmp.eq.s32.totalorder %s1224_s15, 1  ;;  %p104_p3 = scmp.ne.s32.totalorder %s1557_s10, %s1553_s9 }
   0x8   : > { %s2238_s17 = smov (%p25_p0, %s24_s17), 0  ;;  %p105_p5 = scmp.eq.s32.totalorder %s1225_s16, 1 }
   0x9   : > { %p1640_p4 = por %p99_p2, %p98_p1  ;;  %s83_s20 = ssub.s32 %s1569_s13, %s2238_s17 }
   0xa   : > { %p1229_p6 = scmp.ge.s32.totalorder %s1573_s14, 1  ;;  %p86_p7 = scmp.eq.s32.totalorder %s83_s20, 0 }
   0xb   : > { %p1647_p8 = por %p105_p5, %p104_p3  ;;  %p138_p9 = scmp.lt.s32.totalorder %s1573_s14, 3 }
   0xc   : > { %s1653_s22 = scalar_select %p86_p7, %s1561_s11, %s88_s18  }
   0xd   : > { %p139_p10 = pnand %p1229_p6, %p138_p9 }
   0xe   : > { %p164_p11 = scmp.lt.s32.totalorder (!%p139_p10), %s1565_s12, 1  ;;  %s161_s8 = sand.u32 (!%p139_p10), 1, %s1557_s10  }
   0xf   : > { %142 = sbr.rel (%p139_p10) target bundleno = 622 (0x26e), region = 28  ;;  %s1230_s15 = sshll.u32 (!%p139_p10), %s161_s8, 3 }
  0x10   : > { %s1577_s16 = smov (!%p139_p10), 127   ;;  %s2139_s18 = scalar_lea.vmem (!%p139_p10), [#allocation2], %s1230_s15 }
  0x11   : > { %s1578_s20 = smov (!%p139_p10), 126   ;;  %s1579_s23 = smov (!%p139_p10), 125  }
  0x12   : > { %s1580_s24 = smov (!%p139_p10), 124   ;;  %s1581_s25 = smov (!%p139_p10), 123  }
  0x13   : > { %s1582_s26 = smov (!%p139_p10), 122   ;;  %s1141_s29 = sshll.u32 (!%p139_p10), %s2139_s18, 4  ;;  %s1142_s29 = int_to_ptr.vmem [resolvable:$true] %s1141_s29 }
  0x14   : > { %v1476_v0 = vld [vmem:[%s2198_s1] sm:$0xff]   ;;  %v1575_v1 = vmov 0.0   ;;  %v1477_v2 = vld [vmem:[%s2198_s1 + $0x8] sm:$0xff]   ;;  %vm1576_vm0 = vmmov 0   ;;  %s165_s27 = scalar_select %p164_p11, %s1565_s12, 1  ;;  %vm257_vm1 = vcmask 130048  }
  0x15   : > { %1327 = vmatprep.subr.bf16.mxu1 %v1575_v1  ;;  %1305 = vmatprep.subr.bf16.mxu0 %v1575_v1  ;;  %v1481_v3 = vld [vmem:[%s2198_s1 + $0x18] sm:$0xff]   ;;  %vm211_vm2 = vsmask.f32 7424  ;;  %v1480_v12 = vld [vmem:[%s2198_s1 + $0x10] sm:$0xff]   ;;  %vm647_vm3 = vcmask 1046528   ;;  %s1127_s5 = scalar_lea.sflag [#allocation3], %s161_s8 }
  0x16   : > { %1328 = vmatpush3.bf16.msra.mxu1 %v1476_v0  ;;  %1329 = vmatprep.mubr.msk.bf16.mxu1 %vm1576_vm0, %v1575_v1  ;;  %s1393_s28 = smul.u32 44, %s165_s27  ;;  %s1583_s27 = smov 121  }
  0x17   : > { %1306 = vmatpush3.bf16.msra.mxu0 %v1477_v2  ;;  %1307 = vmatprep.mubr.msk.bf16.mxu0 %vm1576_vm0, %v1575_v1  ;;  %s1497_s6 = scalar_lea.vmem %s1142_s29, 128  ;;  %s1584_s7 = smov [#allocation2]  }
  0x18   : > { %1349 = vmatprep.subr.bf16.mxu0 %v1575_v1  ;;  %1371 = vmatprep.subr.bf16.mxu1 %v1575_v1  ;;  %s1674_s3 = scalar_lea.vmem %s2197_s0, %s1393_s28  ;;  %s1278_s28 = sshll.u32 %s1565_s12, 7 }
  0x19   : > { %v1478_v4 = vld [vmem:[%s1674_s3] sm:$0xff]   ;;  %v1479_v5 = vld [vmem:[%s1674_s3 + $0x8] sm:$0xff]   ;;  %v1482_v9 = vld [vmem:[%s1674_s3 + $0x10] sm:$0xff]   ;;  %s2154_s4 = scalar_lea.hbm %s2199_s2, %s1278_s28  ;;  %p1498_p12 = scmp.ne.s32.totalorder %s1142_s29, %s1497_s6 }
  0x1a   : > { %1330 = vmatmul.mubr.msk.bf16.vlgmr.msra.gmra.mxu1 %vm257_vm1, %v1478_v4  ;;  %v213_v6 = vshrl.u32 %v1478_v4, 16  ;;  %v215_v7 = vshll.u32 %v1478_v4, 16  ;;  %v220_v8 = vshll.u32 %v1479_v5, 16  ;;  %v224_v14 = vshrl.u32 %v1479_v5, 16  ;;  %v1483_v19 = vld [vmem:[%s1674_s3 + $0x18] sm:$0xff]   ;;  %v1487_v41 = vld [vmem:[%s1674_s3 + $0x4] sm:$0xff]  }
  0x1b   : > { %1372 = vmatpush3.bf16.msra.mxu1 %v1481_v3  ;;  %1333 = vmatprep.mubr.msk.bf16.mxu1 %vm1576_vm0, %v1575_v1  ;;  %v228_v15 = vshll.u32 %v1482_v9, 16  ;;  %v232_v20 = vshrl.u32 %v1482_v9, 16  ;;  %v236_v22 = vshll.u32 %v1483_v19, 16  ;;  %v1492_v23 = vld [vmem:[%s1674_s3 + $0x1c] sm:$0xff]   ;;  %v1700_v26 = vld [vmem:[%s1674_s3 + $0x24] ss:$0 sps:$4 sm:$0xff]   ;;  %p1499_p13 = pnand %p1498_p12, %p1640_p4 }
  0x1c   : > { %v217_v10 = vrot.slane %v215_v7, 1  ;;  %v222_v11 = vrot.slane %v220_v8, 1  ;;  %v492_v24 = vshll.u32 %v1492_v23, 16  ;;  %v496_v25 = vshrl.u32 %v1492_v23, 16  ;;  %v1484_v29 = vld [vmem:[%s1674_s3 + $0x20] ss:$0 sps:$4 sm:$0xff]  }
  0x1d   : > { %v230_v18 = vrot.slane %v228_v15, 1  ;;  %v238_v28 = vrot.slane %v236_v22, 1  ;;  %v500_v31 = vshll.u32 %v1700_v26, 16  ;;  %v240_v35 = vshrl.u32 %v1483_v19, 16  ;;  %v1485_v42 = vld [vmem:[%s1674_s3 + $0x4] sm:$0xfe]   ;;  %p1500_p0 = pneg %p1499_p13 }
  0x1e   : > { %v218_v13 = vor.u32 %v217_v10, %v213_v6  ;;  %v226_v17 = vor.u32 %v224_v14, %v222_v11  ;;  %v1706_v30 = vrot.slane %v492_v24, 1  ;;  %v244_v36 = vshll.u32 %v1484_v29, 16  ;;  %v1486_v43 = vld [vmem:[%s1674_s3 + $0xc] sm:$0xff]   ;;  %v1489_v54 = vld [vmem:[%s1674_s3 + $0x14] sm:$0xff]   ;;  %v1491_v63 = vld [vmem:[%s1674_s3 + $0x1c] sm:$0xff]   ;;  %s1501_s12 = sshll.u32 %s1584_s7, 4  ;;  %s1502_s12 = int_to_ptr.vmem [resolvable:$false] %s1501_s12 }
  0x1f   : > { %v234_v27 = vor.u32 %v232_v20, %v230_v18  ;;  %v1712_v33 = vrot.slane %v500_v31, 1  ;;  %v242_v38 = vor.u32 %v240_v35, %v238_v28  ;;  %v248_v44 = vshrl.u32 %v1484_v29, 16  ;;  %v1488_v45 = vld [vmem:[%s1674_s3 + $0xc] sm:$0xff]   ;;  %v1490_v57 = vld [vmem:[%s1674_s3 + $0x14] sm:$0xff]   ;;  %v1493_v7 = vld [vmem:[%s1674_s3 + $0x24] sm:$0x1f]   ;;  %p1504_p1 = scmp.lt.s32.totalorder %s1142_s29, %s1502_s12 }
  0x20   : > { %v223_v16 = vsel %vm211_vm2, %v218_v13, %v222_v11  ;;  %v231_v21 = vsel %vm211_vm2, %v226_v17, %v230_v18  ;;  %v498_v32 = vor.u32 %v496_v25, %v1706_v30  ;;  %v246_v39 = vrot.slane %v244_v36, 1  ;;  %s1503_s15 = scalar_lea.vmem %s1502_s12, 256 }
  0x21   : > { %1308 = vmatmul.mubr.msk.bf16.vlgmr.msra.gmra.mxu0 %vm257_vm1, %v223_v16  ;;  %v239_v34 = vsel %vm211_vm2, %v234_v27, %v238_v28  ;;  %v471_v46 = vshll.u32 %v1487_v41, 16  ;;  %v648_v47 = vrot.slane %v1485_v42, 1  ;;  %v649_v48 = vrot.slane %v1486_v43, 1  ;;  %p1505_p2 = scmp.lt.s32.totalorder %s1503_s15, %s1497_s6 }
  0x22   : > { %1350 = vmatpush3.bf16.msra.mxu0 %v1480_v12  ;;  %1334 = vmatmul.mubr.msk.bf16.gmra.mxu1 %vm257_vm1, %v1479_v5  ;;  %v1717_v37 = vsel %vm211_vm2, %v498_v32, %v1712_v33  ;;  %v247_v40 = vsel %vm211_vm2, %v242_v38, %v246_v39  ;;  %v250_v49 = vor.u32 %v248_v44, %v246_v39  ;;  %v469_v50 = vshrl.u32 %v1487_v41, 16 }
  0x23   : > { %1311 = vmatprep.mubr.msk.bf16.mxu0 %vm1576_vm0, %v1575_v1  ;;  %1337 = vmatprep.mubr.msk.bf16.mxu1 %vm1576_vm0, %v1575_v1  ;;  %v473_v51 = vrot.slane %v471_v46, 1  ;;  %v476_v52 = vshll.u32 %v1488_v45, 16  ;;  %v650_v53 = vsel %vm647_vm3, %v648_v47, %v649_v48  ;;  %v651_v58 = vrot.slane %v1489_v54, 1  ;;  %p1506_p3 = por %p1505_p2, %p1504_p1 }
  0x24   : > { %v480_v60 = vshrl.u32 %v1488_v45, 16  ;;  %v484_v61 = vshll.u32 %v1490_v57, 16  ;;  %v653_v3 = vrot.slane %v1491_v63, 1  ;;  %v488_v5 = vshrl.u32 %v1490_v57, 16 }
  0x25   : > { %v474_v55 = vor.u32 %v473_v51, %v469_v50  ;;  %v478_v56 = vrot.slane %v476_v52, 1  ;;  %v652_v62 = vsel %vm647_vm3, %v649_v48, %v651_v58  ;;  %v504_v12 = vshrl.u32 %v1700_v26, 16  ;;  %p1507_p5 = pnand %p1506_p3, %p1500_p0 }
  0x26   : > { %v486_v2 = vrot.slane %v484_v61, 1  ;;  %v654_v6 = vsel %vm647_vm3, %v651_v58, %v653_v3  ;;  %v759_v28 = vlaneseq }
  0x27   : > { %v479_v59 = vsel %vm211_vm2, %v474_v55, %v478_v56  ;;  %v482_v0 = vor.u32 %v480_v60, %v478_v56  ;;  %v506_v13 = vor.u32 %v504_v12, %v1712_v33 }
  0x28   : > { %v490_v8 = vor.u32 %v488_v5, %v486_v2  ;;  %v1800_v33 = vshrl.u32 %v759_v28, 7 }
  0x29   : > { %1312 = vmatmul.mubr.msk.bf16.gmra.mxu0 %vm257_vm1, %v231_v21  ;;  %v487_v4 = vsel %vm211_vm2, %v482_v0, %v486_v2 }
  0x2a   : > { %1338 = vmatmul.mubr.msk.bf16.gmra.mxu1 %vm257_vm1, %v1482_v9  ;;  %1315 = vmatprep.mubr.msk.bf16.mxu0 %vm1576_vm0, %v1575_v1  ;;  %v655_v9 = vrot.slane %v1493_v7, 1  ;;  %v495_v10 = vsel %vm211_vm2, %v490_v8, %v1706_v30  ;;  %v761_v36 = vadd.s32 8, %v1800_v33  ;;  %v762_v44 = vadd.s32 16, %v1800_v33 }
  0x2b   : > { %1341 = vmatprep.mubr.msk.bf16.mxu1 %vm1576_vm0, %v1575_v1  ;;  %v1816_v47 = vadd.s32 24, %v1800_v33  ;;  %v1824_v51 = vmul.u32.u64.low 3817748708, %v1800_v33  ;;  %v1825_v52 = vmul.u32.u64.high 3817748708, %v1800_v33, %v1824_v51  ;;  %v1831_v56 = vadd.s32 40, %v1800_v33 }
  0x2c   : > { %v656_v11 = vsel %vm647_vm3, %v653_v3, %v655_v9  ;;  %v1809_v41 = vmul.u32.u64.low 3817748708, %v761_v36  ;;  %v1810_v42 = vmul.u32.u64.high 3817748708, %v761_v36, %v1809_v41  ;;  %v1844_v0 = vadd.s32 48, %v1800_v33 }
  0x2e   : > { %v786_v61 = vshrl.u32 %v1810_v42, 3  ;;  %v1875_v42 = vadd.s32 64, %v1800_v33 }
  0x31   : > { %1316 = vmatmul.mubr.msk.bf16.gmra.mxu0 %vm257_vm1, %v239_v34 }
  0x32   : > { %1342 = vmatmul.mubr.msk.bf16.gmra.mxu1 %vm257_vm1, %v1483_v19  ;;  %1319 = vmatprep.mubr.msk.bf16.mxu0 %vm1576_vm0, %v1575_v1 }
  0x33   : > { %1345 = vmatprep.mubr.msk.bf16.mxu1 %vm1576_vm0, %v1575_v1 }
  0x39   : > { %1320 = vmatmul.mubr.msk.bf16.gmra.mxu0 %vm257_vm1, %v247_v40 }
  0x3a   : > { %1346 = vmatmul.mubr.msk.bf16.gmra.mxu1 %vm257_vm1, %v1484_v29  ;;  %1323 = vmatprep.mubr.msk.bf16.mxu0 %vm1576_vm0, %v1575_v1 }
  0x3b   : > { %1373 = vmatprep.mubr.msk.bf16.mxu1 %vm1576_vm0, %v1575_v1 }
  0x41   : > { %1324 = vmatmul.mubr.msk.bf16.gmra.mxu0 %vm257_vm1, %v250_v49  ;;  %v764_v49 = vadd.s32 32, %v1800_v33 }
  0x42   : > { %1374 = vmatmul.mubr.msk.bf16.vlgmr.msra.gmra.mxu1 %vm257_vm1, %v650_v53  ;;  %1351 = vmatprep.mubr.msk.bf16.mxu0 %vm1576_vm0, %v1575_v1  ;;  %v1827_v53 = vmul.u32.u64.low 3817748708, %v762_v44  ;;  %v1828_v54 = vmul.u32.u64.high 3817748708, %v762_v44, %v1827_v53 }
  0x43   : > { %1377 = vmatprep.mubr.msk.bf16.mxu1 %vm1576_vm0, %v1575_v1 }
  0x49   : > { %1352 = vmatmul.mubr.msk.bf16.vlgmr.msra.gmra.mxu0 %vm257_vm1, %v479_v59  ;;  %v1834_v58 = vmul.u32.u64.low 3817748708, %v1816_v47  ;;  %v1835_v59 = vmul.u32.u64.high 3817748708, %v1816_v47, %v1834_v58 }
  0x4a   : > { %1378 = vmatmul.mubr.msk.bf16.gmra.mxu1 %vm257_vm1, %v652_v62  ;;  %1355 = vmatprep.mubr.msk.bf16.mxu0 %vm1576_vm0, %v1575_v1  ;;  %v1840_v62 = vmul.u32.u64.low 3817748708, %v764_v49  ;;  %v1841_v63 = vmul.u32.u64.high 3817748708, %v764_v49, %v1840_v62 }
  0x4b   : > { %1381 = vmatprep.mubr.msk.bf16.mxu1 %vm1576_vm0, %v1575_v1 }
  0x51   : > { %1356 = vmatmul.mubr.msk.bf16.gmra.mxu0 %vm257_vm1, %v487_v4  ;;  %v1847_v4 = vmul.u32.u64.low 3817748708, %v1831_v56  ;;  %v1848_v5 = vmul.u32.u64.high 3817748708, %v1831_v56, %v1847_v4 }
  0x52   : > { %1382 = vmatmul.mubr.msk.bf16.gmra.mxu1 %vm257_vm1, %v654_v6  ;;  %1359 = vmatprep.mubr.msk.bf16.mxu0 %vm1576_vm0, %v1575_v1  ;;  %v1851_v6 = vadd.s32 56, %v1800_v33 }
  0x53   : > { %1385 = vmatprep.mubr.msk.bf16.mxu1 %vm1576_vm0, %v1575_v1  ;;  %v830_v41 = vshrl.u32 %v1848_v5, 3 }
  0x59   : > { %1360 = vmatmul.mubr.msk.bf16.gmra.mxu0 %vm257_vm1, %v495_v10 }
  0x5a   : > { %1386 = vmatmul.mubr.msk.bf16.gmra.mxu1 %vm257_vm1, %v656_v11  ;;  %1363 = vmatprep.mubr.msk.bf16.mxu0 %vm1576_vm0, %v1575_v1  ;;  %v1856_v10 = vmul.u32.u64.low 3817748708, %v1844_v0  ;;  %v1857_v11 = vmul.u32.u64.high 3817748708, %v1844_v0, %v1856_v10 }
  0x5b   : > { %1389 = vmatprep.mubr.msk.bf16.mxu1 %vm1576_vm0, %v1575_v1 }
  0x61   : > { %1364 = vmatmul.mubr.msk.bf16.gmra.mxu0 %vm257_vm1, %v1717_v37 }
  0x62   : > { %1390 = vmatmul.mubr.msk.bf16.gmra.mxu1 %vm257_vm1, %v655_v9  ;;  %1367 = vmatprep.mubr.msk.bf16.mxu0 %vm1576_vm0, %v1575_v1  ;;  %v787_v9 = vmul.u32 9, %v786_v61 }
  0x64   : > { %v1868_v28 = vsub.s32 %v761_v36, %v787_v9 }
  0x66   : > { %vm869_vm4 = vcmp.ne.s32.totalorder %v1868_v28, 0  ;;  %vm878_vm5 = vcmp.lt.s32.totalorder %v1868_v28, 0 }
  0x67   : > { %vm1893_vm6 = vmand %vm878_vm5, %vm869_vm4 }
  0x69   : > { %1368 = vmatmul.mubr.msk.bf16.gmra.mxu0 %vm257_vm1, %v506_v13  ;;  %v775_v13 = vshrl.u32 %v1825_v52, 3  ;;  %v841_v52 = vshrl.u32 %v1857_v11, 3 }
  0xda   : > { %v1780_v14 = vpop.f32.mrf.mxu1 }
  0xdc   : > { %v1331_v15 = vpop.f32.mrf.mxu1 }
  0xdd   : > { %v797_v15 = vshrl.u32 %v1828_v54, 3  ;;  %v896_v54 = vadd.s32 9, %v1868_v28 }
  0xde   : > { %v1782_v16 = vpop.f32.mrf.mxu1 }
  0xdf   : > { %v905_v10 = vsel %vm1893_vm6, %v896_v54, %v1868_v28 }
  0xe0   : > { %v1332_v17 = vpop.f32.mrf.mxu1 }
  0xe1   : > { %v1784_v18 = vpop.f32.mrf.mxu0 }
  0xe2   : > { %v1786_v19 = vpop.f32.mrf.mxu1 }
  0xe3   : > { %v1309_v20 = vpop.f32.mrf.mxu0 }
  0xe4   : > { %v1335_v21 = vpop.f32.mrf.mxu1 }
  0xe5   : > { %v1788_v22 = vpop.f32.mrf.mxu0  ;;  %v1864_v20 = vmul.u32.u64.low 3817748708, %v1851_v6  ;;  %v1865_v21 = vmul.u32.u64.high 3817748708, %v1851_v6, %v1864_v20 }
  0xe6   : > { %v1790_v23 = vpop.f32.mrf.mxu1 }
  0xe7   : > { %v1310_v1 = vpop.f32.mrf.mxu0  ;;  %v852_v61 = vshrl.u32 %v1865_v21, 3 }
  0xe8   : > { %v1336_v24 = vpop.f32.mrf.mxu1 }
  0xe9   : > { %v1792_v25 = vpop.f32.mrf.mxu0  ;;  %v808_v24 = vshrl.u32 %v1835_v59, 3  ;;  %v831_v59 = vmul.u32 9, %v830_v41 }
  0xea   : > { %v1794_v26 = vpop.f32.mrf.mxu1 }
  0xeb   : > { %v1313_v27 = vpop.f32.mrf.mxu0 }
  0xec   : > { %v1339_v29 = vpop.f32.mrf.mxu1 }
  0xed   : > { %v1796_v30 = vpop.f32.mrf.mxu0  ;;  %v819_v29 = vshrl.u32 %v1841_v63, 3  ;;  %v1890_v62 = vmul.u32.u64.low 3817748708, %v1875_v42  ;;  %v1891_v63 = vmul.u32.u64.high 3817748708, %v1875_v42, %v1890_v62 }
  0xee   : > { %v1798_v31 = vpop.f32.mrf.mxu1 }
  0xef   : > { %v1314_v32 = vpop.f32.mrf.mxu0  ;;  %v820_v36 = vmul.u32 9, %v819_v29 }
  0xf0   : > { %v1340_v34 = vpop.f32.mrf.mxu1  ;;  %v776_v32 = vmul.u32 9, %v775_v13  ;;  %v399_v13 = vadd.f32 %v1782_v16, %v1788_v22  ;;  %v396_v22 = vadd.f32 %v1780_v14, %v1784_v18  ;;  %v863_v18 = vshrl.u32 %v1891_v63, 3 }
  0xf1   : > { %v1802_v35 = vpop.f32.mrf.mxu0  ;;  %v1900_v5 = vsub.s32 %v764_v49, %v820_v36  ;;  %v853_v49 = vmul.u32 9, %v852_v61 }
  0xf2   : > { %v1805_v37 = vpop.f32.mrf.mxu1  ;;  %v1881_v53 = vsub.s32 %v1800_v33, %v776_v32 }
  0xf3   : > { %v1317_v38 = vpop.f32.mrf.mxu0  ;;  %vm872_vm14 = vcmp.ne.s32.totalorder %v1900_v5, 0  ;;  %vm881_vm15 = vcmp.lt.s32.totalorder %v1900_v5, 0  ;;  %v1947_v14 = vsub.s32 %v1851_v6, %v853_v49 }
  0xf4   : > { %v1343_v39 = vpop.f32.mrf.mxu1  ;;  %v798_v38 = vmul.u32 9, %v797_v15  ;;  %vm868_vm7 = vcmp.ne.s32.totalorder %v1881_v53, 0  ;;  %vm877_vm8 = vcmp.lt.s32.totalorder %v1881_v53, 0  ;;  %vm1965_vm4 = vmand %vm881_vm15, %vm872_vm14 }
  0xf5   : > { %v1807_v40 = vpop.f32.mrf.mxu0  ;;  %vm1921_vm12 = vmand %vm877_vm8, %vm868_vm7  ;;  %vm1976_vm7 = vcmp.lt.s32.totalorder %v905_v10, 8  ;;  %v902_v10 = vadd.s32 9, %v1947_v14 }
  0xf6   : > { %v1812_v43 = vpop.f32.mrf.mxu1 }
  0xf7   : > { %v1318_v45 = vpop.f32.mrf.mxu0 }
  0xf8   : > { %v1344_v46 = vpop.f32.mrf.mxu1 }
  0xf9   : > { %v1818_v48 = vpop.f32.mrf.mxu0  ;;  %v809_v46 = vmul.u32 9, %v808_v24 }
  0xfa   : > { %v1821_v50 = vpop.f32.mrf.mxu1 }
  0xfb   : > { %v1321_v55 = vpop.f32.mrf.mxu0 }
  0xfc   : > { %v1347_v57 = vpop.f32.mrf.mxu1 }
  0xfd   : > { %v1837_v60 = vpop.f32.mrf.mxu0  ;;  %v1886_v57 = vsub.s32 %v762_v44, %v798_v38  ;;  %v842_v44 = vmul.u32 9, %v841_v52 }
  0xfe   : > { %v430_v2 = vpop.f32.mrf.mxu1 }
  0xff   : > { %v1322_v3 = vpop.f32.mrf.mxu0  ;;  %vm870_vm9 = vcmp.ne.s32.totalorder %v1886_v57, 0  ;;  %vm879_vm10 = vcmp.lt.s32.totalorder %v1886_v57, 0  ;;  %v897_v15 = vadd.s32 9, %v1886_v57  ;;  %v1929_v16 = vsub.s32 %v1844_v0, %v842_v44 }
 0x100   : > { %v1348_v7 = vpop.f32.mrf.mxu1  ;;  %v1898_v3 = vsub.s32 %v1816_v47, %v809_v46  ;;  %v1912_v47 = vsub.s32 %v1831_v56, %v831_v59  ;;  %vm1940_vm0 = vmand %vm879_vm10, %vm870_vm9  ;;  %vm875_vm9 = vcmp.ne.s32.totalorder %v1947_v14, 0  ;;  %v412_v59 = vadd.f32 %v1794_v26, %v1802_v35 }
 0x101   : > { %v1853_v8 = vpop.f32.mrf.mxu0  ;;  %v895_v7 = vadd.s32 9, %v1881_v53  ;;  %vm874_vm5 = vcmp.ne.s32.totalorder %v1929_v16, 0  ;;  %vm883_vm6 = vcmp.lt.s32.totalorder %v1929_v16, 0 }
 0x102   : > { %v1859_v12 = vpop.f32.mrf.mxu1  ;;  %vm871_vm11 = vcmp.ne.s32.totalorder %v1898_v3, 0  ;;  %vm880_vm13 = vcmp.lt.s32.totalorder %v1898_v3, 0  ;;  %v898_v56 = vadd.s32 9, %v1898_v3  ;;  %vm873_vm1 = vcmp.ne.s32.totalorder %v1912_v47, 0  ;;  %vm2008_vm10 = vmand %vm883_vm6, %vm874_vm5 }
 0x103   : > { %v1325_v17 = vpop.f32.mrf.mxu0  ;;  %vm882_vm2 = vcmp.lt.s32.totalorder %v1912_v47, 0  ;;  %v904_v29 = vsel %vm1921_vm12, %v895_v7, %v1881_v53  ;;  %vm1959_vm3 = vmand %vm880_vm13, %vm871_vm11  ;;  %v900_v41 = vadd.s32 9, %v1912_v47  ;;  %vm884_vm11 = vcmp.lt.s32.totalorder %v1947_v14, 0 }
 0x104   : > { %v1375_v1 = vpop.f32.mrf.mxu1  ;;  %vm1987_vm8 = vmand %vm882_vm2, %vm873_vm1  ;;  %vm2013_vm12 = vcmp.lt.s32.totalorder %v904_v29, 8 }
 0x105   : > { %v342_v27 = vpop.f32.mrf.mxu0  ;;  %v404_v1 = vadd.f32 %v1786_v19, %v1792_v25  ;;  %v407_v19 = vadd.f32 %v1790_v23, %v1796_v30  ;;  %v899_v30 = vadd.s32 9, %v1900_v5  ;;  %vm2039_vm15 = vmand %vm884_vm11, %vm875_vm9  ;;  %vm965_vm9 = vcmask 63488  }
 0x106   : > { %v1871_v34 = vpop.f32.mrf.mxu1 }
 0x107   : > { %v1326_v39 = vpop.f32.mrf.mxu0 }
 0x108   : > { %v1376_v45 = vpop.f32.mrf.mxu1 }
 0x109   : > { %v562_v51 = vpop.f32.mrf.mxu0 }
 0x10a   : > { %v1884_v55 = vpop.f32.mrf.mxu1  ;;  %v600_v25 = vadd.f32 %v562_v51, %v396_v22  ;;  %v906_v51 = vsel %vm1940_vm0, %v897_v15, %v1886_v57  ;;  %v864_v57 = vmul.u32 9, %v863_v18  ;;  %vm949_vm0 = vcmask 64512  }
 0x10b   : > { %v1353_v58 = vpop.f32.mrf.mxu0  ;;  %vm2017_vm13 = vcmp.lt.s32.totalorder %v906_v51, 8  ;;  %v420_v18 = vadd.f32 %v1805_v37, %v1818_v48 }
 0x10c   : > { %v1379_v33 = vpop.f32.mrf.mxu1  ;;  %v901_v58 = vadd.s32 9, %v1929_v16  ;;  %v1999_v61 = vadd.f32 %v1859_v12, %v600_v25  ;;  %v908_v12 = vsel %vm1965_vm4, %v899_v30, %v1900_v5  ;;  %v2044_v49 = vsub.s32 %v1875_v42, %v864_v57 }
 0x10d   : > { %v565_v4 = vpop.f32.mrf.mxu0  ;;  %vm917_vm1 = vcmp.lt.s32.totalorder %v908_v12, 8 }
 0x10e   : > { %v1905_v9 = vpop.f32.mrf.mxu1  ;;  %v601_v24 = vadd.f32 %v565_v4, %v399_v13  ;;  %v910_v5 = vsel %vm2008_vm10, %v901_v58, %v1929_v16  ;;  %v940_v13 = vsel %vm2013_vm12, %v1999_v61, 0.0  ;;  %vm876_vm4 = vcmp.ne.s32.totalorder %v2044_v49, 0 }
 0x10f   : > { %v1354_v11 = vpop.f32.mrf.mxu0  ;;  %vm885_vm5 = vcmp.lt.s32.totalorder %v2044_v49, 0 }
 0x110   : > { %v1380_v17 = vpop.f32.mrf.mxu1  ;;  %v1974_v45 = vadd.f32 %v1871_v34, %v601_v24  ;;  %v907_v34 = vsel %vm1959_vm3, %v898_v56, %v1898_v3  ;;  %vm2061_vm3 = vcmp.lt.s32.totalorder %v910_v5, 8  ;;  %v975_v24 = vmul.f32 %v940_v13, %v940_v13  ;;  %vm2094_vm6 = vmand %vm885_vm5, %vm876_vm4 }
 0x111   : > { %v570_v21 = vpop.f32.mrf.mxu0  ;;  %vm916_vm14 = vcmp.lt.s32.totalorder %v907_v34, 8  ;;  %v423_v34 = vadd.f32 %v1812_v43, %v1837_v60  ;;  %vm1094_vm4 = vcmask 130112   ;;  %vm1104_vm5 = vcmask 261312  }
 0x112   : > { %v728_v27 = vpop.f32.mrf.mxu1  ;;  %v602_v32 = vadd.f32 %v570_v21, %v404_v1  ;;  %v941_v3 = vsel %vm1976_vm7, %v1974_v45, 0.0  ;;  %v911_v1 = vsel %vm2039_vm15, %v902_v10, %v1947_v14  ;;  %v984_v46 = vsel %vm949_vm0, %v975_v24, 0.0 }
 0x113   : > { %v1357_v0 = vpop.f32.mrf.mxu0  ;;  %v976_v21 = vmul.f32 %v941_v3, %v941_v3  ;;  %vm2100_vm7 = vcmp.lt.s32.totalorder %v911_v1, 8 }
 0x114   : > { %v1383_v6 = vpop.f32.mrf.mxu1  ;;  %v2002_v62 = vadd.f32 %v1884_v55, %v602_v32  ;;  %v909_v55 = vsel %vm1987_vm8, %v900_v41, %v1912_v47  ;;  %v950_v32 = vsel %vm949_vm0, %v940_v13, 0.0  ;;  %v903_v41 = vadd.s32 9, %v2044_v49 }
 0x115   : > { %v573_v39 = vpop.f32.mrf.mxu0  ;;  %vm2056_vm2 = vcmp.lt.s32.totalorder %v909_v55, 8  ;;  %v985_v14 = vsel %vm949_vm0, %v976_v21, 0.0 }
 0x116   : > { %v603_v36 = vadd.f32 %v573_v39, %v407_v19  ;;  %v731_v52 = vpop.f32.mrf.mxu1  ;;  %v942_v15 = vsel %vm2017_vm13, %v2002_v62, 0.0  ;;  %v912_v47 = vsel %vm2094_vm6, %v903_v41, %v2044_v49  ;;  %vm1109_vm6 = vcmask 326912  }
 0x117   : > { %v1358_v54 = vpop.f32.mrf.mxu0  ;;  %v977_v28 = vmul.f32 %v942_v15, %v942_v15  ;;  %v953_v38 = vsel %vm949_vm0, %v942_v15, 0.0  ;;  %vm921_vm8 = vcmp.lt.s32.totalorder %v912_v47, 8 }
 0x118   : > { %v1384_v63 = vpop.f32.mrf.mxu1  ;;  %v2031_v4 = vadd.f32 %v1905_v9, %v603_v36  ;;  %v415_v9 = vadd.f32 %v1798_v31, %v1807_v40  ;;  %v986_v54 = vadd.f32 %v985_v14, %v984_v46 }
 0x119   : > { %v578_v35 = vpop.f32.mrf.mxu0  ;;  %v987_v51 = vsel %vm949_vm0, %v977_v28, 0.0 }
 0x11a   : > { %v604_v44 = vadd.f32 %v578_v35, %v412_v59  ;;  %v736_v7 = vpop.f32.mrf.mxu1  ;;  %v943_v31 = vsel %vm916_vm14, %v2031_v4, 0.0  ;;  %v988_v60 = vadd.f32 %v987_v51, %v986_v54 }
 0x11b   : > { %v1361_v11 = vpop.f32.mrf.mxu0  ;;  %v978_v6 = vmul.f32 %v943_v31, %v943_v31  ;;  %v955_v36 = vsel %vm949_vm0, %v943_v31, 0.0 }
 0x11c   : > { %v2054_v17 = vadd.f32 %v728_v27, %v604_v44  ;;  %v1387_v20 = vpop.f32.mrf.mxu1  ;;  %v951_v27 = vsel %vm949_vm0, %v941_v3, 0.0 }
 0x11d   : > { %v581_v56 = vpop.f32.mrf.mxu0  ;;  %v952_v23 = vadd.f32 %v951_v27, %v950_v32  ;;  %v989_v2 = vsel %vm949_vm0, %v978_v6, 0.0 }
 0x11e   : > { %v605_v40 = vadd.f32 %v581_v56, %v415_v9  ;;  %v739_v22 = vpop.f32.mrf.mxu1  ;;  %v944_v19 = vsel %vm917_vm1, %v2054_v17, 0.0  ;;  %v428_v9 = vadd.f32 %v1821_v50, %v1853_v8  ;;  %v990_v13 = vadd.f32 %v989_v2, %v988_v60 }
 0x11f   : > { %v1362_v0 = vpop.f32.mrf.mxu0  ;;  %v954_v58 = vadd.f32 %v953_v38, %v952_v23  ;;  %v957_v33 = vsel %vm949_vm0, %v944_v19, 0.0 }
 0x120   : > { %v2073_v25 = vadd.f32 %v731_v52, %v605_v40  ;;  %v1388_v29 = vpop.f32.mrf.mxu1  ;;  %v979_v52 = vmul.f32 %v944_v19, %v944_v19 }
 0x121   : > { %v586_v39 = vpop.f32.mrf.mxu0  ;;  %v956_v12 = vadd.f32 %v955_v36, %v954_v58 }
 0x122   : > { %v945_v37 = vsel %vm2056_vm2, %v2073_v25, 0.0  ;;  %v606_v48 = vadd.f32 %v586_v39, %v420_v18  ;;  %v744_v30 = vpop.f32.mrf.mxu1 }
 0x123   : > { %v1365_v53 = vpop.f32.mrf.mxu0  ;;  %v980_v26 = vmul.f32 %v945_v37, %v945_v37  ;;  %v959_v10 = vsel %vm949_vm0, %v945_v37, 0.0  ;;  %v958_v15 = vadd.f32 %v957_v33, %v956_v12 }
 0x124   : > { %v2088_v57 = vadd.f32 %v736_v7, %v606_v48  ;;  %v1391_v59 = vpop.f32.mrf.mxu1  ;;  %v991_v7 = vsel %vm949_vm0, %v979_v52, 0.0 }
 0x125   : > { %v589_v35 = vpop.f32.mrf.mxu0  ;;  %v993_v56 = vsel %vm949_vm0, %v980_v26, 0.0  ;;  %v992_v40 = vadd.f32 %v991_v7, %v990_v13  ;;  %v960_v16 = vadd.f32 %v959_v10, %v958_v15 }
 0x126   : > { %v946_v55 = vsel %vm2061_vm3, %v2088_v57, 0.0  ;;  %v607_v3 = vadd.f32 %v589_v35, %v423_v34  ;;  %v747_v44 = vpop.f32.mrf.mxu1 }
 0x127   : > { %v981_v11 = vmul.f32 %v946_v55, %v946_v55  ;;  %v1366_v5 = vpop.f32.mrf.mxu0  ;;  %v961_v42 = vsel %vm949_vm0, %v946_v55, 0.0  ;;  %v994_v27 = vadd.f32 %v993_v56, %v992_v40 }
 0x128   : > { %v2114_v20 = vadd.f32 %v739_v22, %v607_v3  ;;  %v1392_v21 = vpop.f32.mrf.mxu1  ;;  %v962_v28 = vadd.f32 %v961_v42, %v960_v16 }
 0x129   : > { %v594_v31 = vpop.f32.mrf.mxu0  ;;  %v995_v24 = vsel %vm949_vm0, %v981_v11, 0.0 }
 0x12a   : > { %v947_v1 = vsel %vm2100_vm7, %v2114_v20, 0.0  ;;  %v608_v49 = vadd.f32 %v594_v31, %v428_v9  ;;  %v996_v29 = vadd.f32 %v995_v24, %v994_v27  ;;  %vm1114_vm7 = vcmask 392512  }
 0x12b   : > { %v963_v50 = vsel %vm949_vm0, %v947_v1, 0.0  ;;  %v982_v8 = vmul.f32 %v947_v1, %v947_v1  ;;  %v1369_v22 = vpop.f32.mrf.mxu0 }
 0x12c   : > { %v2123_v0 = vadd.f32 %v744_v30, %v608_v49  ;;  %v964_v32 = vadd.f32 %v963_v50, %v962_v28 }
 0x12d   : > { %v997_v18 = vsel %vm949_vm0, %v982_v8, 0.0  ;;  %v597_v19 = vpop.f32.mrf.mxu0 }
 0x12e   : > { %v948_v14 = vsel %vm921_vm8, %v2123_v0, 0.0  ;;  %v998_v23 = vadd.f32 %v997_v18, %v996_v29  ;;  %vm1119_vm8 = vcmask 458112  }
 0x12f   : > { %v966_v38 = vsel %vm965_vm9, %v948_v14, 0.0  ;;  %v983_v6 = vmul.f32 %v948_v14, %v948_v14  ;;  %v1370_v39 = vpop.f32.mrf.mxu0 }
 0x130   : > { %v967_v37 = vadd.f32 %v966_v38, %v964_v32 }
 0x131   : > { %v999_v48 = vsel %vm965_vm9, %v983_v6, 0.0  ;;  %vm1124_vm9 = vcmask 523712  }
 0x132   : > { %v968_v41 = vrot.slane %v967_v37, 4  ;;  %v1000_v46 = vadd.f32 %v999_v48, %v998_v23 }
 0x134   : > { %v969_v51 = vadd.f32 %v968_v41, %v967_v37  ;;  %v1001_v36 = vrot.slane %v1000_v46, 4 }
 0x136   : > { %v970_v30 = vrot.slane %v969_v51, 2  ;;  %v1002_v52 = vadd.f32 %v1001_v36, %v1000_v46 }
 0x138   : > { %v971_v53 = vadd.f32 %v970_v30, %v969_v51  ;;  %v1003_v34 = vrot.slane %v1002_v52, 2 }
 0x13a   : > { %v972_v54 = vrot.slane %v971_v53, 1  ;;  %v1004_v58 = vadd.f32 %v1003_v34, %v1002_v52 }
 0x13c   : > { %v973_v59 = vadd.f32 %v972_v54, %v971_v53  ;;  %v1005_v63 = vrot.slane %v1004_v58, 1 }
 0x13e   : > { %v974_v2 = vmul.f32 0.015625, %v973_v59  ;;  %v1006_v33 = vadd.f32 %v1005_v63, %v1004_v58 }
 0x140   : > { %v1007_v26 = vmul.f32 0.015625, %v1006_v33  ;;  %v1008_v35 = vmul.f32 %v974_v2, %v974_v2  ;;  %v1010_v12 = vsub.f32 %v1999_v61, %v974_v2  ;;  %v1011_v55 = vsub.f32 %v1974_v45, %v974_v2 }
 0x141   : > { %v1012_v11 = vsub.f32 %v2002_v62, %v974_v2  ;;  %v1013_v13 = vsub.f32 %v2031_v4, %v974_v2  ;;  %v1014_v45 = vsub.f32 %v2054_v17, %v974_v2  ;;  %v1015_v62 = vsub.f32 %v2073_v25, %v974_v2 }
 0x142   : > { %v1009_v43 = vsub.f32 %v1007_v26, %v1008_v35  ;;  %v1016_v4 = vsub.f32 %v2088_v57, %v974_v2  ;;  %v1017_v17 = vsub.f32 %v2114_v20, %v974_v2  ;;  %v1018_v25 = vsub.f32 %v2123_v0, %v974_v2 }
 0x144   : > { %v1019_v60 = vadd.f32 1e-05, %v1009_v43 }
 0x146   : > { %1495 = vrsqrt.f32 %v1019_v60 }
 0x153   : > { %v1496_v3 = vpop.eup %1495 }
 0x154   : > { %v1021_v44 = vmul.f32 %v1496_v3, %v1010_v12  ;;  %v1022_v7 = vmul.f32 %v1496_v3, %v1011_v55  ;;  %v1023_v9 = vmul.f32 %v1496_v3, %v1012_v11  ;;  %v1024_v56 = vmul.f32 %v1496_v3, %v1013_v13 }
 0x155   : > { %v1025_v31 = vmul.f32 %v1496_v3, %v1014_v45  ;;  %v1026_v1 = vmul.f32 %v1496_v3, %v1015_v62  ;;  %v1027_v50 = vmul.f32 %v1496_v3, %v1016_v4  ;;  %v1028_v27 = vmul.f32 %v1496_v3, %v1017_v17 }
 0x156   : > { %vm1030_vm10 = vcmp.ge.f32.partialorder %v1021_v44, 0.0  ;;  %v1039_v10 = vmul.f32 0.2, %v1021_v44  ;;  %v1040_v47 = vmul.f32 0.2, %v1022_v7  ;;  %vm1031_vm11 = vcmp.ge.f32.partialorder %v1022_v7, 0.0 }
 0x157   : > { %v1041_v21 = vmul.f32 0.2, %v1023_v9  ;;  %vm1032_vm12 = vcmp.ge.f32.partialorder %v1023_v9, 0.0  ;;  %v1042_v42 = vmul.f32 0.2, %v1024_v56  ;;  %vm1033_vm13 = vcmp.ge.f32.partialorder %v1024_v56, 0.0 }
 0x158   : > { %v1048_v5 = vsel %vm1030_vm10, %v1021_v44, %v1039_v10  ;;  %v1049_v15 = vsel %vm1031_vm11, %v1022_v7, %v1040_v47  ;;  %v1043_v16 = vmul.f32 0.2, %v1025_v31  ;;  %vm1034_vm14 = vcmp.ge.f32.partialorder %v1025_v31, 0.0 }
 0x159   : > { %1057 = vxpose.xlu0.b32.start [1/9] (short) (narrow) %v1048_v5, 8  ;;  %v1050_v61 = vsel %vm1032_vm12, %v1023_v9, %v1041_v21  ;;  %v1051_v40 = vsel %vm1033_vm13, %v1024_v56, %v1042_v42  ;;  %v1044_v24 = vmul.f32 0.2, %v1026_v1  ;;  %vm1035_vm15 = vcmp.ge.f32.partialorder %v1026_v1, 0.0 }
 0x15a   : > { %v1052_v49 = vsel %vm1034_vm14, %v1025_v31, %v1043_v16  ;;  %v1045_v22 = vmul.f32 0.2, %v1027_v50  ;;  %vm1036_vm1 = vcmp.ge.f32.partialorder %v1027_v50, 0.0  ;;  %v1046_v18 = vmul.f32 0.2, %v1028_v27 }
 0x15b   : > { %v1053_v8 = vsel %vm1035_vm15, %v1026_v1, %v1044_v24  ;;  %v1029_v19 = vmul.f32 %v1496_v3, %v1018_v25  ;;  %vm1037_vm2 = vcmp.ge.f32.partialorder %v1028_v27, 0.0 }
 0x15c   : > { %v1054_v28 = vsel %vm1036_vm1, %v1027_v50, %v1045_v22  ;;  %v1055_v57 = vsel %vm1037_vm2, %v1028_v27, %v1046_v18 }
 0x15d   : > { %1058 = vxpose.xlu0.b32.cont [2/9] (short) (narrow) %v1049_v15, 8  ;;  %v1047_v29 = vmul.f32 0.2, %v1029_v19  ;;  %vm1038_vm3 = vcmp.ge.f32.partialorder %v1029_v19, 0.0 }
 0x15f   : > { %v1056_v32 = vsel %vm1038_vm3, %v1029_v19, %v1047_v29 }
 0x161   : > { %1059 = vxpose.xlu0.b32.cont [3/9] (short) (narrow) %v1050_v61, 8 }
 0x165   : > { %1060 = vxpose.xlu0.b32.cont [4/9] (short) (narrow) %v1051_v40, 8 }
 0x169   : > { %1061 = vxpose.xlu0.b32.cont [5/9] (short) (narrow) %v1052_v49, 8 }
 0x16d   : > { %1062 = vxpose.xlu0.b32.cont [6/9] (short) (narrow) %v1053_v8, 8 }
 0x171   : > { %1063 = vxpose.xlu0.b32.cont [7/9] (short) (narrow) %v1054_v28, 8 }
 0x175   : > { %1064 = vxpose.xlu0.b32.cont [8/9] (short) (narrow) %v1055_v57, 8 }
 0x179   : > { %1065 = vxpose.xlu0.b32.end [9/9] (short) (narrow) %v1056_v32, 8 }
 0x1d5   : > { %v1073_v20 = vpop.trf.xlu0 }
 0x1d6   : > { %1091 = vrot.lane.b32.xlu1 %v1073_v20, %s1577_s16  ;;  %1089 = vst.msk [vmem:[%s2139_s18] sm:$0xff] %vm949_vm0, %v1073_v20  ;;  %vm1099_vm0 = vcmask 195712  }
 0x1da   : > { %1096 = vrot.lane.b32.xlu1 %v1073_v20, %s1578_s20 }
 0x1de   : > { %1101 = vrot.lane.b32.xlu1 %v1073_v20, %s1579_s23 }
 0x1e2   : > { %1106 = vrot.lane.b32.xlu1 %v1073_v20, %s1580_s24 }
 0x1e6   : > { %1111 = vrot.lane.b32.xlu1 %v1073_v20, %s1581_s25 }
 0x1ea   : > { %1116 = vrot.lane.b32.xlu1 %v1073_v20, %s1582_s26 }
 0x1ee   : > { %1121 = vrot.lane.b32.xlu1 %v1073_v20, %s1583_s27 }
 0x248   : > { %v1092_v0 = vpop.permute.xlu1 %1091 }
 0x249   : > { %1095 = vst.msk [vmem:[%s2139_s18] sm:$0xff] %vm1094_vm4, %v1092_v0 }
 0x24c   : > { %v1097_v14 = vpop.permute.xlu1 %1096 }
 0x24d   : > { %1100 = vst.msk [vmem:[%s2139_s18] sm:$0xff] %vm1099_vm0, %v1097_v14 }
 0x250   : > { %v1102_v38 = vpop.permute.xlu1 %1101 }
 0x251   : > { %1105 = vst.msk [vmem:[%s2139_s18] sm:$0xff] %vm1104_vm5, %v1102_v38 }
 0x254   : > { %v1107_v6 = vpop.permute.xlu1 %1106 }
 0x255   : > { %1110 = vst.msk [vmem:[%s2139_s18] sm:$0xff] %vm1109_vm6, %v1107_v6 }
 0x258   : > { %v1112_v39 = vpop.permute.xlu1 %1111 }
 0x259   : > { %1115 = vst.msk [vmem:[%s2139_s18] sm:$0xff] %vm1114_vm7, %v1112_v39 }
 0x25c   : > { %v1117_v23 = vpop.permute.xlu1 %1116 }
 0x25d   : > { %1120 = vst.msk [vmem:[%s2139_s18] sm:$0xff] %vm1119_vm8, %v1117_v23 }
 0x260   : > { %v1122_v37 = vpop.permute.xlu1 %1121 }
 0x261   : > { %1125 = vst.msk [vmem:[%s2139_s18] sm:$0xff] %vm1124_vm9, %v1122_v37 }
 0x262   : > { %1510 = shalt.err (!%p1507_p5)
}
 0x263   : > { %s1511_s16 = scalar_lea.hbm %s2154_s4, 128  ;;  %s1515_s20 = scalar_lea.hbm %s2199_s2, 256 }
 0x264   : > { %p1512_p6 = scmp.ne.s32.totalorder %s2154_s4, %s1511_s16  ;;  %p1516_p10 = scmp.lt.s32.totalorder %s2154_s4, %s2199_s2 }
 0x265   : > { %p1517_p11 = scmp.lt.s32.totalorder %s1515_s20, %s1511_s16 }
 0x266   : > { %p1513_p7 = pnand %p1512_p6, %p1640_p4 }
 0x267   : > { %p1518_p12 = por %p1517_p11, %p1516_p10 }
 0x268   : > { %p1514_p9 = pneg %p1513_p7 }
 0x26a   : > { %p1519_p13 = pnand %p1518_p12, %p1514_p9 }
 0x26c   : > { %1522 = shalt.err (!%p1519_p13)
}
 0x26d   : > { %1412 = dma.vmem_to_hbm [thread:$0]  (%p1640_p4), %s1142_s29, 128, %s2154_s4, %s1127_s5  }
 0x26e PF: > { %p1418_p0 = scmp.ge.s32.totalorder %s1573_s14, 2  ;;  %s1153_s25 = sand.u32 1, %s1553_s9  }
 0x26f   : > { %s1154_s26 = scalar_lea.sflag [#allocation3], %s1153_s25 }
 0x270   : > { %p1415_p1 = pnand %p1418_p0, %p1647_p8 }
 0x272   : > { %p1416_p2 = pneg %p1415_p1 }
 0x274   : > { %1548 = dma.done.wait (%p1416_p2), %s1154_s26, 128  }
 0x275   : > { %1550 = vsyncadd (%p1416_p2), %s1154_s26, 4294967168  ;;  %s15_s14 = sadd.s32 1, %s1573_s14   ;;  %s2232_s9 = smov %s1557_s10 }
 0x276   : > { %p12_p3 = scmp.ge.s32.totalorder %s15_s14, 4   ;;  %s2233_s10 = smov %s1561_s11 }
 0x277   : > { %s2234_s11 = smov %s1653_s22  ;;  %s2235_s12 = smov %s1569_s13 }
 0x278   : > { %s2236_s13 = smov %s2238_s17  ;;  %14 = sbr.rel (!%p12_p3) target bundleno = 4 (0x4), region = 69 }
 0x27d   :  { %1159 = vsyncpa [#allocation3], 1 }
 0x27e   :  { %1161 = vsyncpa [#allocation3 + $0x1], 1 }

</bundles_post_ra>
